<compile_context>
chip_gen: v5e
topology: v5e:2x2
jax: 0.10.0
libtpu: 0.0.40
codegen_flags: <defaults>
</compile_context>

<pallas_src>
import functools

import jax
import jax.numpy as jnp
import numpy as np
from jax.experimental import pallas as pl
from jax.experimental.pallas import tpu as pltpu


def _head_kernel(x_ref, w1_ref, w2_ref, b_ref, o_ref, acc_ref, *,
                 hid, nc, inv_hw):
    """Fused segmentation head; HW tiled as an 'arbitrary' reduction axis.

    x_ref  : (B*T, C, hw_tile)   f32  video clip tile (spatial dims on lanes)
    w1_ref : (C, HID)            f32  dense layer-1 weights
    w2_ref : (HID, NC)           f32  dense layer-2 weights
    b_ref  : (2, max(HID, NC))   f32  row 0 = b1 (lane-padded), row 1 = b2
    o_ref  : (B*T, NC)           f32  per-frame logits
    acc_ref: (B*T, C)            f32  VMEM sum-pool accumulator
    """
    k = pl.program_id(0)

    @pl.when(k == 0)
    def _():
        acc_ref[...] = jnp.zeros_like(acc_ref)

    # Spatial sum-pool of this HW tile.  x is already f32, so no upcast copy is
    # materialised (a bf16 producer would accumulate into the f32 scratch too).
    acc_ref[...] += jnp.sum(x_ref[...], axis=-1)

    @pl.when(k == pl.num_programs(0) - 1)
    def _():
        feat = acc_ref[...] * inv_hw                      # (B*T, C) mean, f32
        b1 = b_ref[0:1, :hid]                             # (1, HID)
        b2 = b_ref[1:2, :nc]                              # (1, NC)
        h1 = jnp.dot(feat, w1_ref[...],
                     preferred_element_type=jnp.float32) + b1
        h1 = jnp.maximum(h1, 0.0)                         # (B*T, HID)
        out = jnp.dot(h1, w2_ref[...],
                      preferred_element_type=jnp.float32) + b2
        o_ref[...] = out                                  # (B*T, NC)


def _pick_hw_tile(hw):
    """Pick the HW tile for the reduction grid axis.

    Small / non-128-aligned spatial extents run as one block (grid overhead >
    pipelining benefit).  Larger extents use >=512-lane tiles so the pipelined
    x DMA sits near the HBM roofline and the double-buffered block stays well
    inside v7x's 64 MiB VMEM.
    """
    if hw <= 2048 or hw % 128 != 0:
        return hw  # TODO(synk): ragged HW (not a multiple of 128) is not tiled.
    for t in (2048, 1024, 512):
        if hw % t == 0:
            return t
    return 128


def make_synthetic_model(params, sample_rate, data_key="imgs"):
    """Build the wrapped `model`: dict in -> {'output': (B, T*sr, NC)} out."""
    # One-time host-side prep (outside the per-call trace): dense f32 weights
    # and both biases packed into a single (2, max(HID, NC)) DMA channel.
    w1 = params["w1"].astype(jnp.float32)                 # (C, HID)
    w2 = params["w2"].astype(jnp.float32)                 # (HID, NC)
    hid, nc = int(w1.shape[1]), int(w2.shape[1])
    bpad = max(hid, nc)
    b_pack = jnp.zeros((2, bpad), jnp.float32)
    b_pack = b_pack.at[0, :hid].set(params["b1"].reshape(-1).astype(jnp.float32))
    b_pack = b_pack.at[1, :nc].set(params["b2"].reshape(-1).astype(jnp.float32))

    def model(data_dict):
        x = data_dict[data_key]                           # (B, T, C, H, W) f32
        masks = data_dict["masks"]                        # (B, T*sr), all ones
        B, T, C, H, W = x.shape
        HW = H * W
        BT = B * T

        hw_tile = _pick_hw_tile(HW)
        n_hw = HW // hw_tile

        # Free view (contiguous reshape): batch*time on sublanes (M = B*T for
        # the MXU), channels next, spatial dims on lanes.  No dtype cast pass.
        x_in = x.reshape(BT, C, HW)

        out_bt = pl.pallas_call(
            functools.partial(_head_kernel, hid=hid, nc=nc, inv_hw=1.0 / HW),
            out_shape=jax.ShapeDtypeStruct((BT, nc), jnp.float32),
            grid_spec=pltpu.PrefetchScalarGridSpec(
                num_scalar_prefetch=0,
                grid=(n_hw,),
                in_specs=[
                    pl.BlockSpec((BT, C, hw_tile), lambda k: (0, 0, k)),
                    pl.BlockSpec((C, hid), lambda k: (0, 0)),
                    pl.BlockSpec((hid, nc), lambda k: (0, 0)),
                    pl.BlockSpec((2, bpad), lambda k: (0, 0)),
                ],
                out_specs=pl.BlockSpec((BT, nc), lambda k: (0, 0)),
                scratch_shapes=[pltpu.VMEM((BT, C), jnp.float32)],
            ),
            compiler_params=pltpu.CompilerParams(
                dimension_semantics=("arbitrary",),      # HW is a reduction axis
                vmem_limit_bytes=32 * 1024 * 1024,       # headroom on v7x 64 MiB
            ),
        )(x_in, w1, w2, b_pack)

        # Temporal nearest-neighbour upsample by sample_rate (tiny, wrapper-side)
        # then the model's mask multiply.  The wrapper always builds all-ones
        # masks, so under jit this folds to a no-op; real masks would still be
        # honoured here.
        logits = out_bt.reshape(B, T, nc)
        out = jnp.repeat(logits, sample_rate, axis=1)      # (B, T*sr, NC)
        out = out * masks[:, :, None]
        return {"output": out}

    return model


class ModelForwardWrapper:
    """JAX/Pallas port of svtas ModelForwardWrapper (semantics preserved)."""

    def __init__(self, model, data_key, sample_rate):
        self.model = model
        self.data_key = data_key
        self.sample_rate = sample_rate

    def __call__(self, input_tensor):
        # masks = torch.full([B, T * sample_rate], 1.0)   (folded away under jit)
        masks = jnp.full(
            (input_tensor.shape[0], input_tensor.shape[1] * self.sample_rate),
            1.0, dtype=jnp.float32)
        return [self.model({self.data_key: input_tensor, "masks": masks})["output"]]


if __name__ == "__main__":
    # Small shapes implied by the forward: video clip [B, T, C, H, W].
    B, T, C, H, W = 2, 8, 4, 16, 16
    HIDDEN, NUM_CLASSES, SAMPLE_RATE = 32, 8, 2

    key = jax.random.PRNGKey(0)
    kx, k1, k2, k3, k4 = jax.random.split(key, 5)

    x = jax.random.normal(kx, (B, T, C, H, W), dtype=jnp.float32)

    params = {
        "w1": jax.random.normal(k1, (C, HIDDEN), jnp.float32) * 0.1,
        "b1": jax.random.normal(k2, (1, HIDDEN), jnp.float32) * 0.01,
        "w2": jax.random.normal(k3, (HIDDEN, NUM_CLASSES), jnp.float32) * 0.1,
        "b2": jax.random.normal(k4, (1, NUM_CLASSES), jnp.float32) * 0.01,
    }

    model_fn = make_synthetic_model(params, SAMPLE_RATE, data_key="imgs")
    wrapper = ModelForwardWrapper(model=model_fn, data_key="imgs",
                                  sample_rate=SAMPLE_RATE)
    # One jit around the whole forward: the all-ones masks constant is DCE'd /
    # algebraically folded, so it is never materialised on device.
    forward = jax.jit(wrapper.__call__)

    result_list = forward(x)
    out = jax.block_until_ready(result_list[0])
    assert out.shape == (B, T * SAMPLE_RATE, NUM_CLASSES), out.shape
    assert jnp.all(jnp.isfinite(out))

    # Independent float64 numpy reference of the same synthetic model
    # (including the wrapper's all-ones mask multiply).
    xn = np.asarray(x, dtype=np.float64)
    w1n = np.asarray(params["w1"], np.float64)
    b1n = np.asarray(params["b1"], np.float64)
    w2n = np.asarray(params["w2"], np.float64)
    b2n = np.asarray(params["b2"], np.float64)
    feat = xn.reshape(B * T, C, H * W).mean(-1)
    h1 = np.maximum(feat @ w1n + b1n, 0.0)
    logits = (h1 @ w2n + b2n).reshape(B, T, NUM_CLASSES)
    ref = np.repeat(logits, SAMPLE_RATE, axis=1)
    ref = ref * np.ones((B, T * SAMPLE_RATE, 1), np.float64)

    err = float(np.max(np.abs(np.asarray(out, np.float64) - ref)))
    assert np.allclose(np.asarray(out, np.float64), ref, rtol=2e-2, atol=3e-3), err

    print("KERNEL_OK")
</pallas_src>

<mosaic_0001>
module attributes {stable_mosaic.version = 11 : i64} {
  func.func @_head_kernel(%arg0: i32, %arg1: memref<16x4x256xf32, #tpu.memory_space<vmem>>, %arg2: memref<4x32xf32, #tpu.memory_space<vmem>>, %arg3: memref<32x8xf32, #tpu.memory_space<vmem>>, %arg4: memref<2x32xf32, #tpu.memory_space<vmem>>, %arg5: memref<16x8xf32, #tpu.memory_space<vmem>>, %arg6: memref<16x4xf32, #tpu.memory_space<vmem>>) attributes {dimension_semantics = [#tpu.dimension_semantics<arbitrary>], iteration_bounds = array<i64: 1>, scalar_prefetch = 0 : i64, scratch_operands = 1 : i64, tpu.core_type = #tpu.core_type<tc>, window_params = [{transform_indices = @transform_0, window_bounds = array<i64: 16, 4, 256>}, {pipeline_mode = #tpu.pipeline_mode<synchronous>, transform_indices = @transform_1, window_bounds = array<i64: 4, 32>}, {pipeline_mode = #tpu.pipeline_mode<synchronous>, transform_indices = @transform_2, window_bounds = array<i64: 32, 8>}, {pipeline_mode = #tpu.pipeline_mode<synchronous>, transform_indices = @transform_3, window_bounds = array<i64: 2, 32>}, {pipeline_mode = #tpu.pipeline_mode<synchronous>, transform_indices = @transform_4, window_bounds = array<i64: 16, 8>}]} {
    %c0_i32 = arith.constant 0 : i32
    %0 = arith.cmpi eq, %arg0, %c0_i32 : i32
    %1 = arith.extui %0 : i1 to i32
    %c0_i32_0 = arith.constant 0 : i32
    %2 = arith.cmpi ne, %1, %c0_i32_0 : i32
    scf.if %2 {
      %cst_9 = arith.constant 0.000000e+00 : f32
      %11 = vector.broadcast %cst_9 : f32 to vector<16x4xf32>
      %c0_10 = arith.constant 0 : index
      %c0_11 = arith.constant 0 : index
      %12 = vector.load %arg6[%c0_10, %c0_11] : memref<16x4xf32, #tpu.memory_space<vmem>>, vector<16x4xf32>
      tpu.vector_store %arg6[%c0_10, %c0_11], %11 {strides = array<i32>} : memref<16x4xf32, #tpu.memory_space<vmem>>, vector<16x4xf32>,
    } else {
    }
    %c0 = arith.constant 0 : index
    %c0_1 = arith.constant 0 : index
    %3 = vector.load %arg6[%c0, %c0_1] : memref<16x4xf32, #tpu.memory_space<vmem>>, vector<16x4xf32>
    %c0_2 = arith.constant 0 : index
    %c0_3 = arith.constant 0 : index
    %c0_4 = arith.constant 0 : index
    %4 = vector.load %arg1[%c0_2, %c0_3, %c0_4] : memref<16x4x256xf32, #tpu.memory_space<vmem>>, vector<16x4x256xf32>
    %cst = arith.constant dense<0.000000e+00> : vector<16x4xf32>
    %5 = vector.multi_reduction <add>, %4, %cst [2] : vector<16x4x256xf32> to vector<16x4xf32>
    %6 = arith.addf %3, %5 : vector<16x4xf32>
    %c0_5 = arith.constant 0 : index
    %c0_6 = arith.constant 0 : index
    %7 = vector.load %arg6[%c0_5, %c0_6] : memref<16x4xf32, #tpu.memory_space<vmem>>, vector<16x4xf32>
    tpu.vector_store %arg6[%c0_5, %c0_6], %6 {strides = array<i32>} : memref<16x4xf32, #tpu.memory_space<vmem>>, vector<16x4xf32>,
    %c0_i32_7 = arith.constant 0 : i32
    %8 = arith.cmpi eq, %arg0, %c0_i32_7 : i32
    %9 = arith.extui %8 : i1 to i32
    %c0_i32_8 = arith.constant 0 : i32
    %10 = arith.cmpi ne, %9, %c0_i32_8 : i32
    scf.if %10 {
      %c0_9 = arith.constant 0 : index
      %c0_10 = arith.constant 0 : index
      %11 = vector.load %arg6[%c0_9, %c0_10] : memref<16x4xf32, #tpu.memory_space<vmem>>, vector<16x4xf32>
      %cst_11 = arith.constant 3.906250e-03 : f32
      %12 = vector.broadcast %cst_11 : f32 to vector<16x4xf32>
      %13 = arith.mulf %11, %12 : vector<16x4xf32>
      %c0_12 = arith.constant 0 : index
      %c0_13 = arith.constant 0 : index
      %14 = vector.load %arg4[%c0_12, %c0_13] : memref<2x32xf32, #tpu.memory_space<vmem>>, vector<1x32xf32>
      %c1 = arith.constant 1 : index
      %c0_14 = arith.constant 0 : index
      %15 = vector.load %arg4[%c1, %c0_14] : memref<2x32xf32, #tpu.memory_space<vmem>>, vector<1x8xf32>
      %c0_15 = arith.constant 0 : index
      %c0_16 = arith.constant 0 : index
      %16 = vector.load %arg2[%c0_15, %c0_16] : memref<4x32xf32, #tpu.memory_space<vmem>>, vector<4x32xf32>
      %cst_17 = arith.constant dense<0.000000e+00> : vector<16x32xf32>
      %17 = tpu.matmul %13, %16, %cst_17 {dimension_numbers = #tpu.dot_dimension_numbers<[1], [0], [0], [1], [0, 0, 1, 1], [], []>} : vector<16x4xf32>, vector<4x32xf32>, vector<16x32xf32> -> vector<16x32xf32>
      %18 = vector.broadcast %14 : vector<1x32xf32> to vector<16x32xf32>
      %19 = arith.addf %17, %18 : vector<16x32xf32>
      %cst_18 = arith.constant 0.000000e+00 : f32
      %20 = vector.broadcast %cst_18 : f32 to vector<16x32xf32>
      %21 = arith.maximumf %19, %20 : vector<16x32xf32>
      %c0_19 = arith.constant 0 : index
      %c0_20 = arith.constant 0 : index
      %22 = vector.load %arg3[%c0_19, %c0_20] : memref<32x8xf32, #tpu.memory_space<vmem>>, vector<32x8xf32>
      %cst_21 = arith.constant dense<0.000000e+00> : vector<16x8xf32>
      %23 = tpu.matmul %21, %22, %cst_21 {dimension_numbers = #tpu.dot_dimension_numbers<[1], [0], [0], [1], [0, 0, 1, 1], [], []>} : vector<16x32xf32>, vector<32x8xf32>, vector<16x8xf32> -> vector<16x8xf32>
      %24 = vector.broadcast %15 : vector<1x8xf32> to vector<16x8xf32>
      %25 = arith.addf %23, %24 : vector<16x8xf32>
      %c0_22 = arith.constant 0 : index
      %c0_23 = arith.constant 0 : index
      %26 = vector.load %arg5[%c0_22, %c0_23] : memref<16x8xf32, #tpu.memory_space<vmem>>, vector<16x8xf32>
      tpu.vector_store %arg5[%c0_22, %c0_23], %25 {strides = array<i32>} : memref<16x8xf32, #tpu.memory_space<vmem>>, vector<16x8xf32>,
    } else {
    }
    return
  }
  func.func @transform_0(%arg0: i32) -> (i32, i32, i32) {
    %c0_i32 = arith.constant 0 : i32
    %c0_i32_0 = arith.constant 0 : i32
    %c0_i32_1 = arith.constant 0 : i32
    return %c0_i32, %c0_i32_0, %arg0 : i32, i32, i32
  }
  func.func @transform_1(%arg0: i32) -> (i32, i32) {
    %c0_i32 = arith.constant 0 : i32
    %c0_i32_0 = arith.constant 0 : i32
    %c0_i32_1 = arith.constant 0 : i32
    return %c0_i32, %c0_i32_0 : i32, i32
  }
  func.func @transform_2(%arg0: i32) -> (i32, i32) {
    %c0_i32 = arith.constant 0 : i32
    %c0_i32_0 = arith.constant 0 : i32
    %c0_i32_1 = arith.constant 0 : i32
    return %c0_i32, %c0_i32_0 : i32, i32
  }
  func.func @transform_3(%arg0: i32) -> (i32, i32) {
    %c0_i32 = arith.constant 0 : i32
    %c0_i32_0 = arith.constant 0 : i32
    %c0_i32_1 = arith.constant 0 : i32
    return %c0_i32, %c0_i32_0 : i32, i32
  }
  func.func @transform_4(%arg0: i32) -> (i32, i32) {
    %c0_i32 = arith.constant 0 : i32
    %c0_i32_0 = arith.constant 0 : i32
    %c0_i32_1 = arith.constant 0 : i32
    return %c0_i32, %c0_i32_0 : i32, i32
  }
}

</mosaic_0001>

<bundles_post_ra>
// kernel: a_call__.1
= control target key start
LH: loop header
LB: loop body
LE: loop exit
PB: predicated region body
PF: predicated region fallthrough
CT: control target
= control target key end

     0   :  { %vm141_vm0 = vcmask 1043456   ;;  %vm21_vm1 = vcmask 31744   ;;  %vm258_vm2 = vcmask 1042434   ;;  %vm256_vm3 = vcmask 1041409   ;;  %s575_s0 = inlined_call_operand.vmem [shape: f32[16,4,256], index: 0, kind: input, shape index: {}]   ;;  %s576_s3 = inlined_call_operand.vmem [shape: f32[2,32], index: 3, kind: input, shape index: {}]   ;;  %s577_s1 = inlined_call_operand.vmem [shape: f32[4,32], index: 1, kind: input, shape index: {}]   ;;  %s578_s2 = inlined_call_operand.vmem [shape: f32[32,8], index: 2, kind: input, shape index: {}]   ;;  %s579_s4 = inlined_call_operand.vmem [shape: f32[16,8], index: 4, kind: output, shape index: {}]  }
   0x1   :  { %v27_v0 = vld [vmem:[%s575_s0 + $0x8] sm:$0xff]  ;;  %v26_v1 = vld [vmem:[%s575_s0] sm:$0xff]  ;;  %v28_v2 = vld [vmem:[%s575_s0 + $0x10] sm:$0xff]  ;;  %vm260_vm4 = vcmask 1043459   ;;  %vm262_vm5 = vcmask 1044484   ;;  %vm264_vm6 = vcmask 1045509  }
   0x2   :  { %62 = vst [vmem:[#allocation1 + $0x10] ss:$2 sm:$0xff] %v27_v0  ;;  %v29_v3 = vld [vmem:[%s575_s0 + $0x18] sm:$0xff]  ;;  %v31_v4 = vld [vmem:[%s575_s0 + $0x28] sm:$0xff]  ;;  %v30_v5 = vld [vmem:[%s575_s0 + $0x20] sm:$0xff]  ;;  %vm266_vm7 = vcmask 1046534  }
   0x3   :  { %58 = vst [vmem:[#allocation1] ss:$2 sm:$0xff] %v26_v1  ;;  %v32_v10 = vld [vmem:[%s575_s0 + $0x30] sm:$0xff]  ;;  %v33_v16 = vld [vmem:[%s575_s0 + $0x38] sm:$0xff]  ;;  %v35_v21 = vld [vmem:[%s575_s0 + $0x48] sm:$0xff]  ;;  %vm268_vm8 = vcmask 1047559  }
   0x4   :  { %66 = vst [vmem:[#allocation1 + $0x20] ss:$2 sm:$0xff] %v28_v2  ;;  %v34_v23 = vld [vmem:[%s575_s0 + $0x40] sm:$0xff]  ;;  %v36_v26 = vld [vmem:[%s575_s0 + $0x50] sm:$0xff]  ;;  %v37_v29 = vld [vmem:[%s575_s0 + $0x58] sm:$0xff]  ;;  %vm334_vm9 = vcmask 261120  }
   0x5   :  { %70 = vst [vmem:[#allocation1 + $0x30] ss:$2 sm:$0xff] %v29_v3  ;;  %v39_v32 = vld [vmem:[%s575_s0 + $0x68] sm:$0xff]  ;;  %v38_v35 = vld [vmem:[%s575_s0 + $0x60] sm:$0xff]  ;;  %v40_v38 = vld [vmem:[%s575_s0 + $0x70] sm:$0xff]  ;;  %vm364_vm10 = vcmask 64512  }
   0x6   :  { %v41_v43 = vld [vmem:[%s575_s0 + $0x78] sm:$0xff] }
   0x9   :  { %v63_v6 = vld.sshfl [vmem:[#allocation1 + $0x10] sm:$0xff pattern:$0x75316420]  ;;  %v64_v7 = vld.sshfl [vmem:[#allocation1 + $0x18] sm:$0xff pattern:$0x75316420] }
   0xa   :  { %v147_v8 = vsel %vm141_vm0, %v63_v6, 0.0  ;;  %v148_v9 = vsel %vm141_vm0, %v64_v7, 0.0  ;;  %76 = vst [vmem:[#allocation1 + $0x10] ss:$2 sm:$0xff] %v31_v4 }
   0xb   :  { %v149_v11 = vadd.f32 %v148_v9, %v147_v8  ;;  %v59_v12 = vld.sshfl [vmem:[#allocation1] sm:$0xff pattern:$0x75316420]  ;;  %v60_v13 = vld.sshfl [vmem:[#allocation1 + $0x8] sm:$0xff pattern:$0x75316420] }
   0xc   :  { %v142_v14 = vsel %vm141_vm0, %v59_v12, 0.0  ;;  %v143_v15 = vsel %vm141_vm0, %v60_v13, 0.0  ;;  %73 = vst [vmem:[#allocation1] ss:$2 sm:$0xff] %v30_v5 }
   0xd   :  { %150 = vadd.xlane.f32.xlu0 %v149_v11  ;;  %v144_v17 = vadd.f32 %v143_v15, %v142_v14  ;;  %v438_v18 = vld.sshfl [vmem:[#allocation1 + $0x20] sm:$0xff pattern:$0x75316420]  ;;  %v440_v19 = vld.sshfl [vmem:[#allocation1 + $0x28] sm:$0xff pattern:$0x75316420] }
   0xe   :  { %79 = vst [vmem:[#allocation1 + $0x20] ss:$2 sm:$0xff] %v32_v10  ;;  %v442_v20 = vld.sshfl [vmem:[#allocation1 + $0x30] sm:$0xff pattern:$0x75316420] }
   0xf   :  { %145 = vadd.xlane.f32.xlu2 %v144_v17  ;;  %v447_v22 = vld.sshfl [vmem:[#allocation1 + $0x38] sm:$0xff pattern:$0x75316420]  ;;  %v157_v14 = vsel %vm141_vm0, %v442_v20, 0.0 }
  0x10   :  { %82 = vst [vmem:[#allocation1 + $0x30] ss:$2 sm:$0xff] %v33_v16  ;;  %v158_v15 = vsel %vm141_vm0, %v447_v22, 0.0 }
  0x11   :  { %v452_v24 = vld.sshfl [vmem:[#allocation1 + $0x10] sm:$0xff pattern:$0x75316420]  ;;  %v454_v25 = vld.sshfl [vmem:[#allocation1 + $0x18] sm:$0xff pattern:$0x75316420] }
  0x12   :  { %88 = vst [vmem:[#allocation1 + $0x10] ss:$2 sm:$0xff] %v35_v21  ;;  %v152_v21 = vsel %vm141_vm0, %v438_v18, 0.0 }
  0x13   :  { %v459_v27 = vld.sshfl [vmem:[#allocation1] sm:$0xff pattern:$0x75316420]  ;;  %v461_v28 = vld.sshfl [vmem:[#allocation1 + $0x8] sm:$0xff pattern:$0x75316420] }
  0x14   :  { %85 = vst [vmem:[#allocation1] ss:$2 sm:$0xff] %v34_v23  ;;  %v162_v16 = vsel %vm141_vm0, %v459_v27, 0.0  ;;  %v163_v17 = vsel %vm141_vm0, %v461_v28, 0.0  ;;  %v153_v23 = vsel %vm141_vm0, %v440_v19, 0.0  ;;  %v167_v19 = vsel %vm141_vm0, %v452_v24, 0.0 }
  0x15   :  { %v466_v30 = vld.sshfl [vmem:[#allocation1 + $0x20] sm:$0xff pattern:$0x75316420]  ;;  %v468_v31 = vld.sshfl [vmem:[#allocation1 + $0x28] sm:$0xff pattern:$0x75316420] }
  0x16   :  { %91 = vst [vmem:[#allocation1 + $0x20] ss:$2 sm:$0xff] %v36_v26  ;;  %v159_v26 = vadd.f32 %v158_v15, %v157_v14  ;;  %v172_v20 = vsel %vm141_vm0, %v466_v30, 0.0  ;;  %v173_v22 = vsel %vm141_vm0, %v468_v31, 0.0  ;;  %v168_v28 = vsel %vm141_vm0, %v454_v25, 0.0 }
  0x17   :  { %v473_v33 = vld.sshfl [vmem:[#allocation1 + $0x30] sm:$0xff pattern:$0x75316420]  ;;  %v475_v34 = vld.sshfl [vmem:[#allocation1 + $0x38] sm:$0xff pattern:$0x75316420]  ;;  %v238_v25 = vlaneseq }
  0x18   :  { %94 = vst [vmem:[#allocation1 + $0x30] ss:$2 sm:$0xff] %v37_v29  ;;  %v164_v29 = vadd.f32 %v163_v17, %v162_v16  ;;  %v177_v27 = vsel %vm141_vm0, %v473_v33, 0.0  ;;  %v178_v18 = vsel %vm141_vm0, %v475_v34, 0.0  ;;  %v384_v30 = vmov 0.0  }
  0x19   :  { %v89_v36 = vld.sshfl [vmem:[#allocation1 + $0x10] sm:$0xff pattern:$0x75316420]  ;;  %v90_v37 = vld.sshfl [vmem:[#allocation1 + $0x18] sm:$0xff pattern:$0x75316420] }
  0x1a   :  { %100 = vst [vmem:[#allocation1 + $0x10] ss:$2 sm:$0xff] %v39_v32  ;;  %v187_v52 = vsel %vm141_vm0, %v89_v36, 0.0  ;;  %v188_v53 = vsel %vm141_vm0, %v90_v37, 0.0  ;;  %v154_v32 = vadd.f32 %v153_v23, %v152_v21  ;;  %v179_v36 = vadd.f32 %v178_v18, %v177_v27  ;;  %v293_v24 = vld [vmem:[%s577_s1] sm:$0xf] }
  0x1b   :  { %v86_v39 = vld.sshfl [vmem:[#allocation1] sm:$0xff pattern:$0x75316420]  ;;  %v87_v40 = vld.sshfl [vmem:[#allocation1 + $0x8] sm:$0xff pattern:$0x75316420]  ;;  %v189_v56 = vadd.f32 %v188_v53, %v187_v52  ;;  %v169_v37 = vadd.f32 %v168_v28, %v167_v19  ;;  %376 = vmatpush.msk.msra.mxu3 %vm141_vm0, %v293_v24  ;;  %371 = vmatpush.msk.msra.mxu0 %vm141_vm0, %v293_v24 }
  0x1c   :  { %v182_v41 = vsel %vm141_vm0, %v86_v39, 0.0  ;;  %v183_v42 = vsel %vm141_vm0, %v87_v40, 0.0  ;;  %97 = vst [vmem:[#allocation1] ss:$2 sm:$0xff] %v38_v35  ;;  %v174_v35 = vadd.f32 %v173_v22, %v172_v20  ;;  %v239_v39 = vand.u32 127, %v238_v25  ;;  %v331_v19 = vld [vmem:[%s578_s2 + $0x10] sm:$0xff] }
  0x1d   :  { %v92_v44 = vld.sshfl [vmem:[#allocation1 + $0x20] sm:$0xff pattern:$0x75316420]  ;;  %v93_v45 = vld.sshfl [vmem:[#allocation1 + $0x28] sm:$0xff pattern:$0x75316420]  ;;  %v184_v46 = vadd.f32 %v183_v42, %v182_v41 }
  0x1e   :  { %v192_v47 = vsel %vm141_vm0, %v92_v44, 0.0  ;;  %v193_v48 = vsel %vm141_vm0, %v93_v45, 0.0  ;;  %103 = vst [vmem:[#allocation1 + $0x20] ss:$2 sm:$0xff] %v40_v38  ;;  %v330_v28 = vld [vmem:[%s578_s2 + $0x8] sm:$0xff] }
  0x1f   :  { %v194_v49 = vadd.f32 %v193_v48, %v192_v47  ;;  %185 = vadd.xlane.f32.xlu0 %v184_v46  ;;  %v95_v50 = vld.sshfl [vmem:[#allocation1 + $0x30] sm:$0xff pattern:$0x75316420]  ;;  %v96_v51 = vld.sshfl [vmem:[#allocation1 + $0x38] sm:$0xff pattern:$0x75316420] }
  0x20   :  { %106 = vst [vmem:[#allocation1 + $0x30] ss:$2 sm:$0xff] %v41_v43  ;;  %v197_v54 = vsel %vm141_vm0, %v95_v50, 0.0  ;;  %v198_v55 = vsel %vm141_vm0, %v96_v51, 0.0  ;;  %v383_v24 = vld [vmem:[%s576_s3 + $0x1] ss:$0 sm:$0xff] }
  0x21   :  { %195 = vadd.xlane.f32.xlu1 %v194_v49  ;;  %v101_v59 = vld.sshfl [vmem:[#allocation1 + $0x10] sm:$0xff pattern:$0x75316420]  ;;  %v102_v62 = vld.sshfl [vmem:[#allocation1 + $0x18] sm:$0xff pattern:$0x75316420]  ;;  %v199_v63 = vadd.f32 %v198_v55, %v197_v54 }
  0x22   :  { %v207_v5 = vsel %vm141_vm0, %v101_v59, 0.0  ;;  %v208_v6 = vsel %vm141_vm0, %v102_v62, 0.0  ;;  %23 = vst.msk [vmem:[#allocation2 + $0x8] sm:$0xff] %vm21_vm1, %v384_v30 }
  0x23   :  { %v98_v57 = vld.sshfl [vmem:[#allocation1] sm:$0xff pattern:$0x75316420]  ;;  %v99_v58 = vld.sshfl [vmem:[#allocation1 + $0x8] sm:$0xff pattern:$0x75316420]  ;;  %v209_v11 = vadd.f32 %v208_v6, %v207_v5 }
  0x24   :  { %v202_v60 = vsel %vm141_vm0, %v98_v57, 0.0  ;;  %v203_v61 = vsel %vm141_vm0, %v99_v58, 0.0  ;;  %22 = vst.msk [vmem:[#allocation2] sm:$0xff] %vm21_vm1, %v384_v30 }
  0x25   :  { %v204_v0 = vadd.f32 %v203_v61, %v202_v60  ;;  %v104_v1 = vld.sshfl [vmem:[#allocation1 + $0x20] sm:$0xff pattern:$0x75316420]  ;;  %v105_v2 = vld.sshfl [vmem:[#allocation1 + $0x28] sm:$0xff pattern:$0x75316420] }
  0x26   :  { %v212_v7 = vsel %vm141_vm0, %v104_v1, 0.0  ;;  %v213_v8 = vsel %vm141_vm0, %v105_v2, 0.0  ;;  %v332_v61 = vld [vmem:[%s578_s2 + $0x18] sm:$0xff] }
  0x27   :  { %190 = vadd.xlane.f32.xlu0 %v189_v56  ;;  %205 = vadd.xlane.f32.xlu2 %v204_v0  ;;  %v107_v3 = vld.sshfl [vmem:[#allocation1 + $0x30] sm:$0xff pattern:$0x75316420]  ;;  %v108_v4 = vld.sshfl [vmem:[#allocation1 + $0x38] sm:$0xff pattern:$0x75316420]  ;;  %v214_v12 = vadd.f32 %v213_v8, %v212_v7 }
  0x28   :  { %v217_v9 = vsel %vm141_vm0, %v107_v3, 0.0  ;;  %v218_v10 = vsel %vm141_vm0, %v108_v4, 0.0  ;;  %377 = vmatpush.msra.mxu2 %v332_v61  ;;  %353 = vmatpush.msra.mxu1 %v332_v61 }
  0x29   :  { %200 = vadd.xlane.f32.xlu1 %v199_v63  ;;  %v219_v13 = vadd.f32 %v218_v10, %v217_v9  ;;  %v25_v59 = vld [vmem:[#allocation2 + $0x8] sm:$0xff] }
  0x2a   :  { %378 = vmatpush.msra.mxu2 %v331_v19  ;;  %354 = vmatpush.msra.mxu1 %v331_v19 }
  0x2c   :  { %379 = vmatpush.msra.mxu2 %v330_v28  ;;  %355 = vmatpush.msra.mxu1 %v330_v28 }
  0x2f   :  { %210 = vadd.xlane.f32.xlu2 %v209_v11  ;;  %215 = vadd.xlane.f32.xlu0 %v214_v12 }
  0x31   :  { %220 = vadd.xlane.f32.xlu1 %v219_v13 }
  0x37   :  { %160 = vadd.xlane.f32.xlu2 %v159_v26  ;;  %165 = vadd.xlane.f32.xlu0 %v164_v29  ;;  %v24_v29 = vld [vmem:[#allocation2] sm:$0xff] }
  0x39   :  { %155 = vadd.xlane.f32.xlu1 %v154_v32 }
  0x3f   :  { %175 = vadd.xlane.f32.xlu2 %v174_v35  ;;  %180 = vadd.xlane.f32.xlu0 %v179_v36  ;;  %v329_v35 = vld [vmem:[%s578_s2] sm:$0xff] }
  0x40   :  { %380 = vmatpush.msra.mxu2 %v329_v35  ;;  %356 = vmatpush.msra.mxu1 %v329_v35  ;;  %v382_v36 = vld [vmem:[%s576_s3] ss:$0 sm:$0xff] }
  0x41   :  { %170 = vadd.xlane.f32.xlu1 %v169_v37 }
  0x80   :  { %v151_v31 = vpop.xlane.xlu0 %150 }
  0x81   :  { %v241_v2 = vperm.slane %v151_v31, %v239_v39 }
  0x82   :  { %v146_v33 = vpop.xlane.xlu2 %145 }
  0x83   :  { %v240_v3 = vperm.slane %v146_v33, %v239_v39 }
  0x85   :  { %v257_v6 = vsel %vm256_vm3, %v241_v2, %v240_v3 }
  0x92   :  { %v186_v34 = vpop.xlane.xlu0 %185 }
  0x93   :  { %v248_v42 = vperm.slane %v186_v34, %v239_v39 }
  0x94   :  { %v196_v38 = vpop.xlane.xlu1 %195 }
  0x95   :  { %v250_v44 = vperm.slane %v196_v38, %v239_v39 }
  0x9a   :  { %v191_v40 = vpop.xlane.xlu0 %190  ;;  %v206_v41 = vpop.xlane.xlu2 %205 }
  0x9b   :  { %v249_v43 = vperm.slane %v191_v40, %v239_v39  ;;  %v252_v50 = vperm.slane %v206_v41, %v239_v39 }
  0x9c   :  { %v201_v45 = vpop.xlane.xlu1 %200 }
  0x9d   :  { %v270_v46 = vsel %vm256_vm3, %v249_v43, %v248_v42  ;;  %v251_v48 = vperm.slane %v201_v45, %v239_v39 }
  0x9e   :  { %v271_v47 = vsel %vm258_vm2, %v250_v44, %v270_v46 }
  0x9f   :  { %v272_v49 = vsel %vm260_vm4, %v251_v48, %v271_v47 }
  0xa0   :  { %v273_v55 = vsel %vm262_vm5, %v252_v50, %v272_v49 }
  0xa2   :  { %v211_v51 = vpop.xlane.xlu2 %210  ;;  %v216_v52 = vpop.xlane.xlu0 %215 }
  0xa3   :  { %v253_v53 = vperm.slane %v211_v51, %v239_v39  ;;  %v254_v54 = vperm.slane %v216_v52, %v239_v39 }
  0xa4   :  { %v221_v56 = vpop.xlane.xlu1 %220 }
  0xa5   :  { %v255_v57 = vperm.slane %v221_v56, %v239_v39  ;;  %v274_v58 = vsel %vm264_vm6, %v253_v53, %v273_v55 }
  0xa6   :  { %v275_v60 = vsel %vm266_vm7, %v254_v54, %v274_v58 }
  0xa7   :  { %v276_v62 = vsel %vm268_vm8, %v255_v57, %v275_v60 }
  0xa8   :  { %v280_v63 = vadd.f32 %v276_v62, %v25_v59 }
  0xaa   :  { %283 = vst.msk [vmem:[#allocation2 + $0x8] sm:$0xff] %vm21_vm1, %v280_v63  ;;  %v161_v0 = vpop.xlane.xlu2 %160  ;;  %v166_v1 = vpop.xlane.xlu0 %165 }
  0xab   :  { %v243_v7 = vperm.slane %v161_v0, %v239_v39  ;;  %v244_v10 = vperm.slane %v166_v1, %v239_v39 }
  0xac   :  { %v156_v4 = vpop.xlane.xlu1 %155 }
  0xad   :  { %v242_v5 = vperm.slane %v156_v4, %v239_v39 }
  0xaf   :  { %v259_v8 = vsel %vm258_vm2, %v242_v5, %v257_v6 }
  0xb0   :  { %v261_v14 = vsel %vm260_vm4, %v243_v7, %v259_v8 }
  0xb1   :  { %v288_v9 = vld [vmem:[#allocation2 + $0x8] sm:$0xff]  ;;  %v263_v23 = vsel %vm262_vm5, %v244_v10, %v261_v14 }
  0xb2   :  { %v176_v11 = vpop.xlane.xlu2 %175  ;;  %v181_v12 = vpop.xlane.xlu0 %180  ;;  %v290_v13 = vmul.f32 0.00390625, %v288_v9 }
  0xb3   :  { %v246_v16 = vperm.slane %v176_v11, %v239_v39  ;;  %v247_v21 = vperm.slane %v181_v12, %v239_v39 }
  0xb4   :  { %v171_v15 = vpop.xlane.xlu1 %170  ;;  %373 = vmatmul.msk.f32.vlgmr.msra.gmra.mxu3 %vm21_vm1, %v290_v13 }
  0xb5   :  { %v245_v17 = vperm.slane %v171_v15, %v239_v39 }
  0xb7   :  { %v265_v26 = vsel %vm264_vm6, %v245_v17, %v263_v23 }
  0xb8   :  { %v267_v32 = vsel %vm266_vm7, %v246_v16, %v265_v26 }
  0xb9   :  { %v269_v20 = vsel %vm268_vm8, %v247_v21, %v267_v32 }
  0xba   :  { %v279_v22 = vadd.f32 %v269_v20, %v24_v29 }
  0xbc   :  { %282 = vst.msk [vmem:[#allocation2] sm:$0xff] %vm21_vm1, %v279_v22 }
  0xc3   :  { %v287_v27 = vld [vmem:[#allocation2] sm:$0xff] }
  0xc4   :  { %v289_v18 = vmul.f32 0.00390625, %v287_v27 }
  0xc6   :  { %372 = vmatmul.msk.f32.vlgmr.msra.gmra.mxu0 %vm21_vm1, %v289_v18 }
 0x137   :  { %v324_v37 = vpop.f32.mrf.mxu3 }
 0x138   :  { %v325_v30 = vadd.f32 %v382_v36, %v324_v37 }
 0x13a   :  { %v328_v31 = vmax.f32 %v325_v30, 0.0 }
 0x13c   :  { %375 = vmatmul.msk.f32.vlgmr.msra.gmra.mxu2 %vm334_vm9, %v328_v31 }
 0x143   :  { %v321_v33 = vpop.f32.mrf.mxu0 }
 0x144   :  { %v322_v34 = vadd.f32 %v382_v36, %v321_v33 }
 0x146   :  { %v327_v38 = vmax.f32 %v322_v34, 0.0 }
 0x148   :  { %374 = vmatmul.msk.f32.vlgmr.msra.gmra.mxu1 %vm334_vm9, %v327_v38 }
 0x1bf   :  { %v361_v25 = vpop.f32.mrf.mxu2 }
 0x1c0   :  { %v362_v39 = vadd.f32 %v383_v24, %v361_v25 }
 0x1c2   :  { %366 = vst.msk [vmem:[%s579_s4 + $0x8] sm:$0xff] %vm364_vm10, %v362_v39 }
 0x1c5   :  { %v358_v40 = vpop.f32.mrf.mxu1 }
 0x1c6   :  { %v359_v41 = vadd.f32 %v383_v24, %v358_v40 }
 0x1c8   :  { %365 = vst.msk [vmem:[%s579_s4] sm:$0xff] %vm364_vm10, %v359_v41 }

</bundles_post_ra>
